<compile_context>
chip_gen: v7x
topology: tpu7x:2x2x1
jax: 0.10.0
libtpu: 0.0.40
codegen_flags: <defaults>
</compile_context>

<pallas_src>
import jax
import jax.numpy as jnp
from jax.experimental import pallas as pl
from jax.experimental.pallas import tpu as pltpu


def _bm_kernel(xk_ref, g_ref, xn_ref, bias_ref, o_ref):
    # xk_ref  : (B, tk)  bf16  -- x slice along the reduction (row) axis k
    # g_ref   : (tk, tn) bf16  -- raw G tile (no symmetrization needed)
    # xn_ref  : (B, tn)  f32   -- x slice along the column-block axis j
    # bias_ref: (1, tn)  f32
    # o_ref   : (B, tn)  f32   -- lane-dense partial products, resident over k
    xn = xn_ref[...]

    # MXU: (B, tk) @ (tk, tn) -> (B, tn), f32 accumulation.
    xg = jnp.dot(xk_ref[...], g_ref[...], preferred_element_type=jnp.float32)

    @pl.when(pl.program_id(1) == 0)
    def _():
        o_ref[...] = bias_ref[...] * xn

    o_ref[...] += xg * xn


def _largest_divisor_tile(dim, cap, align):
    """Largest tile <= cap that divides `dim` and is a multiple of `align`
    (falls back to the full dimension, which is always layout-legal)."""
    if dim <= cap:
        return dim
    t = (cap // align) * align
    while t >= align:
        if dim % t == 0:
            return t
        t -= align
    return dim


def boltzmann_forward(y, G, bias, *, tk_cap=512, tn_cap=512):
    """Pallas forward: y can be (B, D) or (B, ...) which is flattened to (B, D)."""
    x = y.astype(jnp.float32)
    if x.ndim > 2:
        x = x.reshape(x.shape[0], -1)
    B, D = x.shape

    # Parameter glue (setup, not the hot path).  NOTE: no G + G.T here.
    g_bf16 = G.astype(jnp.bfloat16)        # no-op if G is already stored in bf16
    x_bf16 = x.astype(jnp.bfloat16)        # binary states -> exact in bf16
    bias2d = bias.astype(jnp.float32).reshape(1, D)

    tk = _largest_divisor_tile(D, tk_cap, 16)    # sublane axis of the G tile
    tn = _largest_divisor_tile(D, tn_cap, 128)   # lane axis of the G tile
    n_n, n_k = D // tn, D // tk

    partial = pl.pallas_call(
        _bm_kernel,
        out_shape=jax.ShapeDtypeStruct((B, D), jnp.float32),
        grid_spec=pltpu.PrefetchScalarGridSpec(
            num_scalar_prefetch=0,
            grid=(n_n, n_k),                      # reduction axis (k) last
            in_specs=[
                pl.BlockSpec((B, tk), lambda j, k: (0, k)),   # x (matmul LHS)
                # G tile (bump to pipeline_mode=pl.Buffered(3) if DMA is exposed)
                pl.BlockSpec((tk, tn), lambda j, k: (k, j)),
                pl.BlockSpec((B, tn), lambda j, k: (0, j)),   # x (elementwise)
                pl.BlockSpec((1, tn), lambda j, k: (0, j)),   # bias
            ],
            out_specs=pl.BlockSpec((B, tn), lambda j, k: (0, j)),
        ),
        compiler_params=pltpu.CompilerParams(
            dimension_semantics=("parallel", "arbitrary")),
    )(x_bf16, g_bf16, x, bias2d)

    # Trivial final reduction of the lane-dense partial products.
    return jnp.sum(partial, axis=-1)


def _reference(y, G, bias):
    x = y.astype(jnp.float32)
    if x.ndim > 2:
        x = x.reshape(x.shape[0], -1)
    J = G + G.T
    xJ = x @ J
    xJx = jnp.sum(xJ * x, axis=-1)
    b = jnp.sum(bias[None, :] * x, axis=-1)
    return b + 0.5 * xJx


if __name__ == "__main__":
    key = jax.random.PRNGKey(0)
    k_g, k_x = jax.random.split(key)

    # Shapes consistent with the module: input (2, 4, 16, 16) -> n_dims = 1024.
    B, C, H, W = 2, 4, 16, 16
    n_dims = C * H * W

    # Deterministic parameter init (mirrors __init__):
    #   G = randn(n_dims, n_dims) * 0.01
    #   init_bias = ones(n_dims) / n_dims ; bias = log(init_bias + 0.01)
    G = jax.random.normal(k_g, (n_dims, n_dims), dtype=jnp.float32) * 0.01
    init_bias = jnp.ones((n_dims,), dtype=jnp.float32) / n_dims
    bias = jnp.log(init_bias + 0.01)

    # Binary {0, 1} states (the Boltzmann-machine domain); p=0.5 exercises the
    # quadratic term with ~D/2 active units.
    y = jax.random.bernoulli(k_x, p=0.5, shape=(B, C, H, W)).astype(jnp.float32)

    out = jax.block_until_ready(boltzmann_forward(y, G, bias))
    ref = _reference(y, G, bias)

    assert out.shape == (B,)
    # G is streamed in bf16 (f32 MXU accumulation): allow ~3 significant digits
    # on the quadratic term relative to the all-f32 reference.
    assert jnp.allclose(out, ref, rtol=2e-3, atol=2e-3), (out, ref)

    print("KERNEL_OK")
</pallas_src>

<mosaic_0001>
module attributes {stable_mosaic.version = 11 : i64} {
  func.func @_bm_kernel(%arg0: i32, %arg1: i32, %arg2: memref<2x512xbf16, #tpu.memory_space<vmem>>, %arg3: memref<512x512xbf16, #tpu.memory_space<vmem>>, %arg4: memref<2x512xf32, #tpu.memory_space<vmem>>, %arg5: memref<1x512xf32, #tpu.memory_space<vmem>>, %arg6: memref<2x512xf32, #tpu.memory_space<vmem>>) attributes {dimension_semantics = [#tpu.dimension_semantics<parallel>, #tpu.dimension_semantics<arbitrary>], iteration_bounds = array<i64: 2, 2>, scalar_prefetch = 0 : i64, scratch_operands = 0 : i64, tpu.core_type = #tpu.core_type<tc>, window_params = [{transform_indices = @transform_0, window_bounds = array<i64: 2, 512>}, {transform_indices = @transform_1, window_bounds = array<i64: 512, 512>}, {transform_indices = @transform_2, window_bounds = array<i64: 2, 512>}, {transform_indices = @transform_3, window_bounds = array<i64: 1, 512>}, {transform_indices = @transform_4, window_bounds = array<i64: 2, 512>}]} {
    %c0 = arith.constant 0 : index
    %c0_0 = arith.constant 0 : index
    %0 = vector.load %arg4[%c0, %c0_0] : memref<2x512xf32, #tpu.memory_space<vmem>>, vector<2x512xf32>
    %c0_1 = arith.constant 0 : index
    %c0_2 = arith.constant 0 : index
    %1 = vector.load %arg2[%c0_1, %c0_2] : memref<2x512xbf16, #tpu.memory_space<vmem>>, vector<2x512xbf16>
    %c0_3 = arith.constant 0 : index
    %c0_4 = arith.constant 0 : index
    %2 = vector.load %arg3[%c0_3, %c0_4] : memref<512x512xbf16, #tpu.memory_space<vmem>>, vector<512x512xbf16>
    %cst = arith.constant dense<0.000000e+00> : vector<2x512xf32>
    %3 = tpu.matmul %1, %2, %cst {dimension_numbers = #tpu.dot_dimension_numbers<[1], [0], [0], [1], [0, 0, 1, 1], [], []>} : vector<2x512xbf16>, vector<512x512xbf16>, vector<2x512xf32> -> vector<2x512xf32>
    %c0_i32 = arith.constant 0 : i32
    %4 = arith.cmpi eq, %arg1, %c0_i32 : i32
    %5 = arith.extui %4 : i1 to i32
    %c0_i32_5 = arith.constant 0 : i32
    %6 = arith.cmpi ne, %5, %c0_i32_5 : i32
    scf.if %6 {
      %c0_10 = arith.constant 0 : index
      %c0_11 = arith.constant 0 : index
      %11 = vector.load %arg5[%c0_10, %c0_11] : memref<1x512xf32, #tpu.memory_space<vmem>>, vector<1x512xf32>
      %12 = vector.broadcast %11 : vector<1x512xf32> to vector<2x512xf32>
      %13 = arith.mulf %12, %0 : vector<2x512xf32>
      %c0_12 = arith.constant 0 : index
      %c0_13 = arith.constant 0 : index
      %14 = vector.load %arg6[%c0_12, %c0_13] : memref<2x512xf32, #tpu.memory_space<vmem>>, vector<2x512xf32>
      tpu.vector_store %arg6[%c0_12, %c0_13], %13 {strides = array<i32>} : memref<2x512xf32, #tpu.memory_space<vmem>>, vector<2x512xf32>,
    } else {
    }
    %c0_6 = arith.constant 0 : index
    %c0_7 = arith.constant 0 : index
    %7 = vector.load %arg6[%c0_6, %c0_7] : memref<2x512xf32, #tpu.memory_space<vmem>>, vector<2x512xf32>
    %8 = arith.mulf %3, %0 : vector<2x512xf32>
    %9 = arith.addf %7, %8 : vector<2x512xf32>
    %c0_8 = arith.constant 0 : index
    %c0_9 = arith.constant 0 : index
    %10 = vector.load %arg6[%c0_8, %c0_9] : memref<2x512xf32, #tpu.memory_space<vmem>>, vector<2x512xf32>
    tpu.vector_store %arg6[%c0_8, %c0_9], %9 {strides = array<i32>} : memref<2x512xf32, #tpu.memory_space<vmem>>, vector<2x512xf32>,
    return
  }
  func.func @transform_0(%arg0: i32, %arg1: i32) -> (i32, i32) {
    %c0_i32 = arith.constant 0 : i32
    %c0_i32_0 = arith.constant 0 : i32
    return %c0_i32, %arg1 : i32, i32
  }
  func.func @transform_1(%arg0: i32, %arg1: i32) -> (i32, i32) {
    %c0_i32 = arith.constant 0 : i32
    return %arg1, %arg0 : i32, i32
  }
  func.func @transform_2(%arg0: i32, %arg1: i32) -> (i32, i32) {
    %c0_i32 = arith.constant 0 : i32
    %c0_i32_0 = arith.constant 0 : i32
    return %c0_i32, %arg0 : i32, i32
  }
  func.func @transform_3(%arg0: i32, %arg1: i32) -> (i32, i32) {
    %c0_i32 = arith.constant 0 : i32
    %c0_i32_0 = arith.constant 0 : i32
    return %c0_i32, %arg0 : i32, i32
  }
  func.func @transform_4(%arg0: i32, %arg1: i32) -> (i32, i32) {
    %c0_i32 = arith.constant 0 : i32
    %c0_i32_0 = arith.constant 0 : i32
    return %c0_i32, %arg0 : i32, i32
  }
}

</mosaic_0001>

<bundles_post_ra>
// kernel: tpu_custom_call.1
= control target key start
LH: loop header
LB: loop body
LE: loop exit
PB: predicated region body
PF: predicated region fallthrough
CT: control target
= control target key end

     0   :  { %s3044_s0 = inlined_call_operand.hbm [shape: bf16[2,1024], index: 0, kind: input, shape index: {}]   ;;  %s3045_s1 = inlined_call_operand.hbm [shape: bf16[1024,1024], index: 1, kind: input, shape index: {}]   ;;  %s3046_s2 = inlined_call_operand.hbm [shape: f32[2,1024], index: 2, kind: input, shape index: {}]   ;;  %s3047_s3 = inlined_call_operand.hbm [shape: f32[1,1024], index: 3, kind: input, shape index: {}]   ;;  %s3048_s4 = inlined_call_operand.hbm [shape: f32[2,1024], index: 4, kind: output, shape index: {}]  }
   0x1   :  { %3062 = sst [smem:[#allocation24_spill]] %s3044_s0 }
   0x2   :  { %3063 = sst [smem:[#allocation25_spill]] %s3045_s1 }
   0x3   :  { %3064 = sst [smem:[#allocation26_spill]] %s3046_s2 }
   0x4   :  { %3065 = sst [smem:[#allocation27_spill]] %s3048_s4 }
   0x5   :  { %9 = vsyncpa [#allocation3], 0 }
   0x6   :  { %11 = vsyncpa [#allocation3 + $0x1], 0 }
   0x7   :  { %12 = vsyncpa [#allocation6], 0 }
   0x8   :  { %14 = vsyncpa [#allocation6 + $0x1], 0 }
   0x9   :  { %15 = vsyncpa [#allocation9], 0 }
   0xa   :  { %17 = vsyncpa [#allocation9 + $0x1], 0 }
   0xb   :  { %18 = vsyncpa [#allocation4], 0 }
   0xc   :  { %20 = vsyncpa [#allocation4 + $0x1], 0  ;;  %s2431_s15 = smov 0   ;;  %s2433_s16 = smov 0  }
   0xd   :  { %s2435_s17 = smov 0   ;;  %s2437_s18 = smov 0  }
   0xe   :  { %s2439_s19 = smov 0   ;;  %s2441_s20 = smov 0  }
   0xf   :  { %s2443_s21 = smov 0   ;;  %s2445_s22 = smov 0  }
  0x10   :  { %s2447_s23 = smov 0   ;;  %s2449_s24 = smov 0  }
  0x11   :  { %s2451_s25 = smov 0   ;;  %s2453_s26 = smov 0  }
  0x12   :  { %s2455_s27 = smov 0   ;;  %s2457_s28 = smov 0  }
  0x13 LB: > { %3066 = sst [smem:[#allocation16_spill]] %s2361_s20  ;;  %p3055_p0 = scmp.eq.s32.totalorder %s2393_s28, 0  ;;  %s2393_s28 = sphi %s2457_s28, %s26_s28   ;;  %s2389_s27 = sphi %s2455_s27, %s3122_s27   ;;  %s2385_s26 = sphi %s2453_s26, %s3110_s26   ;;  %s2381_s25 = sphi %s2451_s25, %s3121_s25   ;;  %s2377_s24 = sphi %s2449_s24, %s3120_s24   ;;  %s2373_s23 = sphi %s2447_s23, %s3108_s23   ;;  %s2369_s22 = sphi %s2445_s22, %s3119_s22   ;;  %s2365_s21 = sphi %s2443_s21, %s3118_s21   ;;  %s2361_s20 = sphi %s2441_s20, %s3106_s20   ;;  %s2357_s19 = sphi %s2439_s19, %s3117_s19   ;;  %s2353_s18 = sphi %s2437_s18, %s3116_s18   ;;  %s2349_s17 = sphi %s2435_s17, %s3115_s17   ;;  %s2345_s16 = sphi %s2433_s16, %s3114_s16   ;;  %s2341_s15 = sphi %s2431_s15, %s3113_s15  }
  0x14   : > { %3067 = sst [smem:[#allocation17_spill]] %s2373_s23  ;;  %p80_p1 = scmp.ne.s32.totalorder %s2361_s20, %s2357_s19 }
  0x15   : > { %3068 = sst [smem:[#allocation18_spill]] %s2381_s25  ;;  %p3049_p3 = scmp.lt.s32.totalorder %s2393_s28, 4 }
  0x16   : > { %3069 = sst [smem:[#allocation19_spill]] %s2385_s26  ;;  %p82_p4 = por %p80_p1, %p3055_p0 }
  0x17   : > { %s207_s30 = sand.u32 1, %s2393_s28   ;;  %s209_s5 = sand.u32 1, %s2361_s20  }
  0x18   : > { %s1611_s6 = sshll.u32 %s209_s5, 10  ;;  %s1613_s7 = sshll.u32 %s2389_s27, 2 }
  0x19   : > { %s1764_s8 = sshll.u32 %s2385_s26, 9  ;;  %s211_s10 = scalar_lea.vmem [#allocation5], %s1611_s6 }
  0x1a   : > { %s218_s9 = sadd.s32 %s1764_s8, %s1613_s7  ;;  %s221_s11 = sshll.u32 %s211_s10, 4  ;;  %s2514_s11 = int_to_ptr.vmem [resolvable:$true] %s221_s11 }
  0x1b   : > { %s1615_s12 = sshll.u32 %s218_s9, 6  ;;  %s3070_s1 = sld [smem:[#allocation25_spill]] }
  0x1c   : > { %p2523_p5 = pnand %p3049_p3, %p82_p4  ;;  %s2527_s6 = scalar_lea.sflag [#allocation6], %s207_s30 }
  0x1e   : > { %p2117_p7 = pneg %p2523_p5 }
  0x21   : > { %s2519_s29 = scalar_lea.hbm %s3070_s1, %s1615_s12  ;;  %s2120_s10 = scalar_lea.hbm %s3070_s1, 65536 }
  0x22   : > { %s2115_s7 = scalar_lea.hbm %s2519_s29, 16384  ;;  %p2121_p10 = scmp.lt.u32.totalorder %s2519_s29, %s3070_s1 }
  0x23   : > { %p2116_p6 = scmp.ne.s32.totalorder %s2519_s29, %s2115_s7  ;;  %p2122_p11 = scmp.lt.u32.totalorder %s2120_s10, %s2115_s7 }
  0x24   : > { %p2124_p13 = scmp.lt.u32.totalorder %s2115_s7, %s2519_s29 }
  0x25   : > { %p2118_p8 = pnand %p2117_p7, %p2116_p6  ;;  %p2123_p12 = por %p2122_p11, %p2121_p10 }
  0x27   : > { %p2119_p9 = pneg %p2118_p8  ;;  %p2125_p1 = por %p2124_p13, %p2123_p12 }
  0x29   : > { %p2126_p4 = pnand %p2125_p1, %p2119_p9 }
  0x2b   : > { %2129 = shalt.err (!%p2126_p4)
}
  0x2c   : > { %s2130_s30 = scalar_lea.vmem %s2514_s11, 16384  ;;  %s2395_s14 = smov [#allocation5]  }
  0x2d   : > { %p2131_p6 = scmp.ne.s32.totalorder %s2514_s11, %s2130_s30  ;;  %s2135_s8 = sshll.u32 %s2395_s14, 4  ;;  %s2136_s8 = int_to_ptr.vmem [resolvable:$false] %s2135_s8 }
  0x2e   : > { %s2137_s9 = scalar_lea.vmem %s2136_s8, 32768  ;;  %p2138_p2 = scmp.lt.s32.totalorder %s2514_s11, %s2136_s8 }
  0x2f   : > { %p2133_p8 = pnand %p2131_p6, %p2117_p7  ;;  %p2139_p10 = scmp.lt.s32.totalorder %s2137_s9, %s2130_s30 }
  0x31   : > { %p2134_p3 = pneg %p2133_p8  ;;  %p2140_p11 = por %p2139_p10, %p2138_p2 }
  0x33   : > { %p2141_p12 = pnand %p2140_p11, %p2134_p3 }
  0x35   : > { %2144 = shalt.err (!%p2141_p12)
}
  0x36   : > { %s2396_s7 = smov 512   ;;  %s2397_s10 = smov 256  }
  0x37   : > { %s2398_s12 = smov 16   ;;  %p1622_p2 = scmp.ge.s32.totalorder %s2393_s28, 1 }
  0x38   : > { %1792 = dma.hbm_to_vmem [thread:$0]  (!%p2523_p5), %s2519_s29, 16384, %s2514_s11, %s2527_s6, %s2396_s7, %s2397_s10, %s2398_s12  }
  0x39   : > { %p267_p3 = scmp.lt.s32.totalorder %s2393_s28, 5  ;;  %s2562_s30 = sadd.s32 4294967295, %s2393_s28  }
  0x3a   : > { %s35_s14 = sadd.s32 1, %s2385_s26  ;;  %s38_s8 = sadd.s32 1, %s2389_s27 }
  0x3b   : > { %p2557_p7 = pnand %p1622_p2, %p267_p3  ;;  %p36_p9 = scmp.ge.s32.totalorder %s35_s14, 2 }
  0x3c   : > { %s45_s9 = sadd.s32 1, %s2373_s23  ;;  %p52_p5 = scmp.ne.s32.totalorder %s2373_s23, %s2369_s22 }
  0x3d   : > { %s3072_s13 = scalar_select %p2557_p7, 1, 0 }
  0x3e   : > { %p58_p13 = scmp.ne.s32.totalorder %s2369_s22, %s2365_s21  ;;  %s3124_s14 = smov (%p36_p9, %s35_s14), 0 }
  0x3f   : > { %3073 = sst [smem:[#allocation20_spill]] %s3124_s14  ;;  %s3126_s8 = smov (!%p36_p9, %s38_s8), %s2389_s27 }
  0x40   : > { %s42_s29 = ssub.s32 %s2385_s26, %s3124_s14  ;;  %p2578_p1 = por %p3055_p0, %p52_p5 }
  0x41   : > { %p40_p4 = scmp.ge.s32.totalorder %s3126_s8, 2  ;;  %p43_p6 = scmp.eq.s32.totalorder %s42_s29, 0 }
  0x42   : > { %p3054_p8 = scmp.eq.s32.totalorder %s2562_s30, 0  ;;  %s188_s5 = sand.u32 1, %s2373_s23  }
  0x43   : > { %s3128_s8 = smov (%p40_p4, %s3126_s8), 0  ;;  %p3078_p11 = scmp.ne.s32.totalorder %s2357_s19, %s2353_s18 }
  0x44   : > { %3075 = sst [smem:[#allocation21_spill]] %s3128_s8  ;;  %p2591_p10 = por %p3054_p8, %p58_p13 }
  0x45   : > { %s2587_s21 = scalar_select %p43_p6, %s2373_s23, %s45_s9  }
  0x46   : > { %s3077_s7 = scalar_select %p2591_p10, 1, 0 }
  0x47   : > { %3076 = sst [smem:[#allocation22_spill]] %s2587_s21  ;;  %s2597_s10 = ssub.s32 %s2389_s27, %s3128_s8 }
  0x48   : > { %s70_s12 = sor.u32 %s2597_s10, %s42_s29  ;;  %p2605_p12 = por %p3078_p11, %p3054_p8 }
  0x49   : > { %p71_p2 = scmp.eq.s32.totalorder %s70_s12, 0  ;;  %s1608_s9 = sshll.u32 %s188_s5, 2 }
  0x4a   : > { %s3079_s1 = scalar_select %p2605_p12, 1, 0 }
  0x4b   : > { %s3080_s14 = sadd.s32 1, %s2361_s20  ;;  %s1763_s23 = sshll.u32 %s2385_s26, 6 }
  0x4c   : > { %s2613_s21 = scalar_select %p71_p2, %s2361_s20, %s3080_s14  }
  0x4d   : > { %s3082_s0 = sld [smem:[#allocation24_spill]]  ;;  %s192_s18 = scalar_lea.vmem [#allocation2], %s1608_s9 }
  0x4e   : > { %3081 = sst [smem:[#allocation23_spill]] %s2613_s21  ;;  %s200_s29 = sshll.u32 %s192_s18, 4  ;;  %s2621_s29 = int_to_ptr.vmem [resolvable:$true] %s200_s29 }
  0x4f   : > { %p3083_p9 = scmp.lt.s32.totalorder %s2393_s28, 4  ;;  %s189_s14 = scalar_lea.sflag [#allocation3], %s188_s5 }
  0x51   : > { %p2627_p5 = pnand %p3083_p9, %p2578_p1 }
  0x53   : > { %s2619_s8 = scalar_lea.hbm %s3082_s0, %s1763_s23  ;;  %p2147_p4 = pneg %p2627_p5 }
  0x54   : > { %s2145_s4 = scalar_lea.hbm %s2619_s8, 64  ;;  %s2150_s11 = scalar_lea.hbm %s3082_s0, 128 }
  0x55   : > { %p2146_p13 = scmp.ne.s32.totalorder %s2619_s8, %s2145_s4  ;;  %p2151_p1 = scmp.lt.u32.totalorder %s2619_s8, %s3082_s0 }
  0x56   : > { %p2152_p2 = scmp.lt.u32.totalorder %s2150_s11, %s2145_s4  ;;  %p2154_p8 = scmp.lt.u32.totalorder %s2145_s4, %s2619_s8 }
  0x57   : > { %p2148_p6 = pnand %p2147_p4, %p2146_p13 }
  0x58   : > { %p2153_p9 = por %p2152_p2, %p2151_p1 }
  0x59   : > { %p2149_p11 = pneg %p2148_p6 }
  0x5a   : > { %p2155_p0 = por %p2154_p8, %p2153_p9 }
  0x5c   : > { %p2156_p3 = pnand %p2155_p0, %p2149_p11 }
  0x5e   : > { %2159 = shalt.err (!%p2156_p3)
}
  0x5f   : > { %s2160_s5 = scalar_lea.vmem %s2621_s29, 64  ;;  %s2399_s23 = smov [#allocation2]  }
  0x60   : > { %p2161_p13 = scmp.ne.s32.totalorder %s2621_s29, %s2160_s5  ;;  %s2165_s25 = sshll.u32 %s2399_s23, 4  ;;  %s2166_s25 = int_to_ptr.vmem [resolvable:$false] %s2165_s25 }
  0x61   : > { %s2167_s9 = scalar_lea.vmem %s2166_s25, 128  ;;  %p2168_p10 = scmp.lt.s32.totalorder %s2621_s29, %s2166_s25 }
  0x62   : > { %p2163_p6 = pnand %p2161_p13, %p2147_p4  ;;  %p2169_p1 = scmp.lt.s32.totalorder %s2167_s9, %s2160_s5 }
  0x64   : > { %p2164_p12 = pneg %p2163_p6  ;;  %p2170_p2 = por %p2169_p1, %p2168_p10 }
  0x66   : > { %p2171_p8 = pnand %p2170_p2, %p2164_p12 }
  0x68   : > { %2174 = shalt.err (!%p2171_p8)
}
  0x69   : > { %1789 = dma.hbm_to_vmem [thread:$0]  (!%p2627_p5), %s2619_s8, 64, %s2621_s29, %s189_s14  }
  0x6a   : > { %s1605_s4 = sadd.s32 4294967294, %s2393_s28   ;;  %s99_s11 = sadd.s32 1, %s2349_s17 }
  0x6b   : > { %p106_p0 = scmp.ne.s32.totalorder %s2349_s17, %s2345_s16  ;;  %p3085_p10 = scmp.eq.s32.totalorder %s2597_s10, 0 }
  0x6c   : > { %p3086_p12 = scmp.eq.s32.totalorder %s2393_s28, 0  ;;  %p112_p4 = scmp.ne.s32.totalorder %s2345_s16, %s2341_s15 }
  0x6d   : > { %s2663_s12 = scalar_select %p3085_p10, %s2349_s17, %s99_s11  }
  0x6e   : > { %p2667_p3 = por %p106_p0, %p3086_p12  ;;  %p162_p11 = scmp.eq.s32.totalorder %s2562_s30, 3 }
  0x6f   : > { %p168_p9 = scmp.eq.s32.totalorder %s1605_s4, 3  ;;  %p3088_p13 = scmp.eq.s32.totalorder %s2562_s30, 0 }
  0x70   : > { %s2681_s8 = sand.u32 1, %s2349_s17   ;;  %p2683_p5 = por %p162_p11, %p106_p0 }
  0x71   : > { %p2676_p6 = por %p112_p4, %p3088_p13  ;;  %p2687_p1 = por %p168_p9, %p112_p4 }
  0x72   : > { %s3090_s10 = scalar_select %p2683_p5, 1, 0 }
  0x73   : > { %s3089_s5 = scalar_select %p2676_p6, 1, 0 }
  0x74   : > { %s3091_s29 = scalar_select %p2687_p1, 1, 0 }
  0x75   : > { %s1616_s14 = sshll.u32 %s2681_s8, 3  ;;  %s1765_s23 = sshll.u32 %s2389_s27, 7 }
  0x76   : > { %s3092_s2 = sld [smem:[#allocation26_spill]]  ;;  %s235_s11 = scalar_lea.vmem [#allocation7], %s1616_s14 }
  0x77   : > { %s243_s0 = sshll.u32 %s235_s11, 4  ;;  %p3093_p2 = scmp.lt.s32.totalorder %s2393_s28, 4  ;;  %s2706_s0 = int_to_ptr.vmem [resolvable:$true] %s243_s0 }
  0x79   : > { %p2702_p8 = pnand %p3093_p2, %p2667_p3 }
  0x7b   : > { %p2177_p10 = pneg %p2702_p8 }
  0x7c   : > { %s2696_s4 = scalar_lea.hbm %s3092_s2, %s1765_s23  ;;  %s2180_s23 = scalar_lea.hbm %s3092_s2, 256 }
  0x7d   : > { %s2175_s25 = scalar_lea.hbm %s2696_s4, 128  ;;  %p2181_p3 = scmp.lt.u32.totalorder %s2696_s4, %s3092_s2 }
  0x7e   : > { %p2176_p0 = scmp.ne.s32.totalorder %s2696_s4, %s2175_s25  ;;  %p2182_p11 = scmp.lt.u32.totalorder %s2180_s23, %s2175_s25 }
  0x7f   : > { %p2184_p13 = scmp.lt.u32.totalorder %s2175_s25, %s2696_s4 }
  0x80   : > { %p2178_p12 = pnand %p2177_p10, %p2176_p0  ;;  %p2183_p9 = por %p2182_p11, %p2181_p3 }
  0x82   : > { %p2179_p4 = pneg %p2178_p12  ;;  %p2185_p2 = por %p2184_p13, %p2183_p9 }
  0x84   : > { %p2186_p1 = pnand %p2185_p2, %p2179_p4 }
  0x86   : > { %2189 = shalt.err (!%p2186_p1)
}
  0x87   : > { %s2190_s21 = scalar_lea.vmem %s2706_s0, 128  ;;  %s2400_s14 = smov [#allocation7]  }
  0x88   : > { %p2191_p0 = scmp.ne.s32.totalorder %s2706_s0, %s2190_s21  ;;  %s2195_s18 = sshll.u32 %s2400_s14, 4  ;;  %s2196_s18 = int_to_ptr.vmem [resolvable:$false] %s2195_s18 }
  0x89   : > { %s2197_s9 = scalar_lea.vmem %s2196_s18, 256  ;;  %p2198_p6 = scmp.lt.s32.totalorder %s2706_s0, %s2196_s18 }
  0x8a   : > { %p2193_p12 = pnand %p2191_p0, %p2177_p10  ;;  %p2199_p3 = scmp.lt.s32.totalorder %s2197_s9, %s2190_s21 }
  0x8c   : > { %p2194_p5 = pneg %p2193_p12  ;;  %p2200_p11 = por %p2199_p3, %p2198_p6 }
  0x8e   : > { %p2201_p9 = pnand %p2200_p11, %p2194_p5 }
  0x90   : > { %2204 = shalt.err (!%p2201_p9)
}
  0x91   : > { %1795 = dma.hbm_to_vmem [thread:$0]  (!%p2702_p8), %s2696_s4, 128, %s2706_s0, %s2527_s6  }
  0x92   : > { %s1766_s25 = sshll.u32 %s2389_s27, 6  ;;  %s3095_s21 = sshll.u32 %s2681_s8, 2 }
  0x93   : > { %s2739_s14 = scalar_lea.hbm %s3047_s3, %s1766_s25  ;;  %s254_s18 = scalar_lea.vmem [#allocation8], %s3095_s21 }
  0x94   : > { %s262_s9 = sshll.u32 %s254_s18, 4  ;;  %s251_s2 = scalar_lea.sflag [#allocation9], %s2681_s8  ;;  %s263_s9 = int_to_ptr.vmem [resolvable:$true] %s262_s9 }
  0x95   : > { %s2205_s20 = scalar_lea.hbm %s2739_s14, 64  ;;  %s2210_s4 = scalar_lea.hbm %s3047_s3, 128 }
  0x96   : > { %p2206_p6 = scmp.ne.s32.totalorder %s2739_s14, %s2205_s20  ;;  %p2211_p4 = scmp.lt.u32.totalorder %s2739_s14, %s3047_s3 }
  0x97   : > { %p2212_p13 = scmp.lt.u32.totalorder %s2210_s4, %s2205_s20  ;;  %p2214_p0 = scmp.lt.u32.totalorder %s2205_s20, %s2739_s14 }
  0x98   : > { %p2208_p5 = pnand %p2206_p6, %p2177_p10 }
  0x99   : > { %p2213_p2 = por %p2212_p13, %p2211_p4 }
  0x9a   : > { %p2209_p1 = pneg %p2208_p5 }
  0x9b   : > { %p2215_p12 = por %p2214_p0, %p2213_p2 }
  0x9d   : > { %p2216_p3 = pnand %p2215_p12, %p2209_p1 }
  0x9f   : > { %2219 = shalt.err (!%p2216_p3)
}
  0xa0   : > { %s2220_s8 = scalar_lea.vmem %s263_s9, 64  ;;  %s2401_s11 = smov [#allocation8]  }
  0xa1   : > { %p2221_p11 = scmp.ne.s32.totalorder %s263_s9, %s2220_s8  ;;  %s2225_s21 = sshll.u32 %s2401_s11, 4  ;;  %s2226_s21 = int_to_ptr.vmem [resolvable:$false] %s2225_s21 }
  0xa2   : > { %s2227_s18 = scalar_lea.vmem %s2226_s21, 128  ;;  %p2228_p5 = scmp.lt.s32.totalorder %s263_s9, %s2226_s21 }
  0xa3   : > { %p2223_p9 = pnand %p2221_p11, %p2177_p10  ;;  %p2229_p7 = scmp.lt.s32.totalorder %s2227_s18, %s2220_s8 }
  0xa5   : > { %p2224_p6 = pneg %p2223_p9  ;;  %p2230_p4 = por %p2229_p7, %p2228_p5 }
  0xa7   : > { %p2231_p13 = pnand %p2230_p4, %p2224_p6 }
  0xa9   : > { %2234 = shalt.err (!%p2231_p13)
}
  0xaa   : > { %1798 = dma.hbm_to_vmem [thread:$0]  (!%p2702_p8), %s2739_s14, 64, %s263_s9, %s251_s2  }
  0xab   : > { %p3096_p1 = scmp.ne.s32.totalorder %s3072_s13, 0 }
  0xac   : > { %s273_s20 = sand.u32 (!%p3096_p1), 1, %s2369_s22   ;;  %p3097_p10 = scmp.ne.s32.totalorder (!%p3096_p1), %s3077_s7, 0 }
  0xad   : > { %271 = sbr.rel (%p3096_p1) target bundleno = 573 (0x23d), region = 36  ;;  %s2766_s0 = sshll.u32 (!%p3096_p1), %s273_s20, 2 }
  0xae   : > { %s274_s6 = scalar_lea.sflag (!%p3096_p1), [#allocation3], %s273_s20  ;;  %s277_s4 = scalar_lea.vmem (!%p3096_p1), [#allocation2], %s2766_s0 }
  0xb4   : > { %2320 = dma.done.wait (%p3097_p10), %s274_s6, 64  }
  0xb5   : > { %2322 = vsyncadd (%p3097_p10), %s274_s6, 4294967232  ;;  %s282_s2 = sand.u32 1, %s2562_s30   ;;  %s284_s26 = sand.u32 1, %s2357_s19  }
  0xb6   : > { %s1624_s13 = sshll.u32 %s284_s26, 10  ;;  %s283_s14 = scalar_lea.sflag [#allocation6], %s282_s2 }
  0xb7   : > { %s2775_s9 = scalar_lea.vmem [#allocation5], %s1624_s13  ;;  %p3098_p7 = scmp.ne.s32.totalorder %s3079_s1, 0 }
  0xb9   : > { %2324 = dma.done.wait (%p3098_p7), %s283_s14, 16384  }
  0xba   : > { %2326 = vsyncadd (%p3098_p7), %s283_s14, 4294950912  ;;  %s2782_s25 = sand.u32 1, %s2345_s16   ;;  %p3099_p8 = scmp.ne.s32.totalorder %s3089_s5, 0 }
  0xbb   : > { %s1625_s7 = sshll.u32 %s2782_s25, 3 }
  0xbc   : > { %s295_s23 = scalar_lea.vmem [#allocation7], %s1625_s7 }
  0xbd   : > { %2328 = dma.done.wait (%p3099_p8), %s283_s14, 128  }
  0xbe   : > { %2330 = vsyncadd (%p3099_p8), %s283_s14, 4294967168  ;;  %s1626_s30 = sshll.u32 %s2782_s25, 2  ;;  %s301_s1 = scalar_lea.sflag [#allocation9], %s2782_s25 }
  0xbf   : > { %s2793_s8 = scalar_lea.vmem [#allocation8], %s1626_s30 }
  0xc0   : > { %2332 = dma.done.wait (%p3099_p8), %s301_s1, 64  }
  0xc1   : > { %2334 = vsyncadd (%p3099_p8), %s301_s1, 4294967232  ;;  %v2799_v0 = vld [vmem:[%s295_s23] sm:$0xff]  ;;  %v2402_v39 = vmov 1966171168   ;;  %v492_v41 = vlaneseq  ;;  %s2942_s5 = scalar_lea.vmem [#allocation10], %s1625_s7  ;;  %p1757_p2 = scmp.ne.s32.totalorder %s2377_s24, 0 }
  0xc2   : > { %v1923_v1 = vld [vmem:[%s2775_s9 + $0x4] ss:$16 sps:$4 sm:$0xff]   ;;  %v1925_v2 = vld [vmem:[%s2775_s9 + $0xc] ss:$16 sps:$4 sm:$0xff]   ;;  %v1927_v3 = vld [vmem:[%s2775_s9] ss:$16 sps:$4 sm:$0xff]   ;;  %v490_v40 = vunpack.c.l.s4 %v2402_v39 }
  0xc3   : > { %v1928_v4 = vld [vmem:[%s2775_s9 + $0x8] ss:$16 sps:$4 sm:$0xff]   ;;  %1149 = vmatprep.subr.bf16.mxu0 %v1923_v1  ;;  %v1929_v5 = vld [vmem:[%s2775_s9 + $0x24] ss:$16 sps:$4 sm:$0xff]   ;;  %1231 = vmatprep.subr.bf16.mxu1 %v1925_v2  ;;  %v1931_v6 = vld [vmem:[%s2775_s9 + $0x2c] ss:$16 sps:$4 sm:$0xff]  }
  0xc4   : > { %1150 = vmatpush1.bf16.msra.mxu0 %v1927_v3  ;;  %1232 = vmatpush1.bf16.msra.mxu1 %v1928_v4  ;;  %v1933_v7 = vld [vmem:[%s2775_s9 + $0x20] ss:$16 sps:$4 sm:$0xff]   ;;  %v1934_v8 = vld [vmem:[%s2775_s9 + $0x28] ss:$16 sps:$4 sm:$0xff]   ;;  %v1935_v9 = vld [vmem:[%s2775_s9 + $0x44] ss:$16 sps:$4 sm:$0xff]   ;;  %v491_v46 = vunpack.c.0.s8 %v490_v40 }
  0xc5   : > { %1151 = vmatprep.subr.bf16.mxu0 %v1929_v5  ;;  %1233 = vmatprep.subr.bf16.mxu1 %v1931_v6  ;;  %v1937_v10 = vld [vmem:[%s2775_s9 + $0x4c] ss:$16 sps:$4 sm:$0xff]   ;;  %v1939_v11 = vld [vmem:[%s2775_s9 + $0x40] ss:$16 sps:$4 sm:$0xff]   ;;  %v1940_v12 = vld [vmem:[%s2775_s9 + $0x48] ss:$16 sps:$4 sm:$0xff]  }
  0xc6   : > { %v1941_v13 = vld [vmem:[%s2775_s9 + $0x64] ss:$16 sps:$4 sm:$0xff]   ;;  %v1943_v14 = vld [vmem:[%s2775_s9 + $0x6c] ss:$16 sps:$4 sm:$0xff]   ;;  %v1945_v15 = vld [vmem:[%s2775_s9 + $0x60] ss:$16 sps:$4 sm:$0xff]  }
  0xc7   : > { %v1946_v16 = vld [vmem:[%s2775_s9 + $0x68] ss:$16 sps:$4 sm:$0xff]   ;;  %v1947_v17 = vld [vmem:[%s2775_s9 + $0x84] ss:$16 sps:$4 sm:$0xff]   ;;  %v1949_v18 = vld [vmem:[%s2775_s9 + $0x8c] ss:$16 sps:$4 sm:$0xff]  }
  0xc8   : > { %1152 = vmatpush1.bf16.msra.mxu0 %v1933_v7  ;;  %1234 = vmatpush1.bf16.msra.mxu1 %v1934_v8  ;;  %v1951_v19 = vld [vmem:[%s2775_s9 + $0x80] ss:$16 sps:$4 sm:$0xff]   ;;  %v1952_v20 = vld [vmem:[%s2775_s9 + $0x88] ss:$16 sps:$4 sm:$0xff]   ;;  %v1953_v21 = vld [vmem:[%s2775_s9 + $0xa4] ss:$16 sps:$4 sm:$0xff]  }
  0xc9   : > { %1153 = vmatprep.subr.bf16.mxu0 %v1935_v9  ;;  %1235 = vmatprep.subr.bf16.mxu1 %v1937_v10  ;;  %v1955_v22 = vld [vmem:[%s2775_s9 + $0xac] ss:$16 sps:$4 sm:$0xff]   ;;  %v1957_v23 = vld [vmem:[%s2775_s9 + $0xa0] ss:$16 sps:$4 sm:$0xff]   ;;  %v1958_v24 = vld [vmem:[%s2775_s9 + $0xa8] ss:$16 sps:$4 sm:$0xff]  }
  0xca   : > { %v1959_v25 = vld [vmem:[%s2775_s9 + $0xc4] ss:$16 sps:$4 sm:$0xff]   ;;  %v1961_v26 = vld [vmem:[%s2775_s9 + $0xcc] ss:$16 sps:$4 sm:$0xff]   ;;  %v1963_v27 = vld [vmem:[%s2775_s9 + $0xc0] ss:$16 sps:$4 sm:$0xff]  }
  0xcb   : > { %v1964_v28 = vld [vmem:[%s2775_s9 + $0xc8] ss:$16 sps:$4 sm:$0xff]   ;;  %v1965_v29 = vld [vmem:[%s2775_s9 + $0xe4] ss:$16 sps:$4 sm:$0xff]   ;;  %v1967_v30 = vld [vmem:[%s2775_s9 + $0xec] ss:$16 sps:$4 sm:$0xff]  }
  0xcc   : > { %1154 = vmatpush1.bf16.msra.mxu0 %v1939_v11  ;;  %1236 = vmatpush1.bf16.msra.mxu1 %v1940_v12  ;;  %v1969_v31 = vld [vmem:[%s2775_s9 + $0xe0] ss:$16 sps:$4 sm:$0xff]   ;;  %v1970_v32 = vld [vmem:[%s2775_s9 + $0xe8] ss:$16 sps:$4 sm:$0xff]   ;;  %v1971_v33 = vld [vmem:[%s2775_s9 + $0x104] ss:$16 sps:$4 sm:$0xff]  }
  0xcd   : > { %1155 = vmatprep.subr.bf16.mxu0 %v1941_v13  ;;  %1237 = vmatprep.subr.bf16.mxu1 %v1943_v14  ;;  %v1973_v34 = vld [vmem:[%s2775_s9 + $0x10c] ss:$16 sps:$4 sm:$0xff]   ;;  %v1975_v35 = vld [vmem:[%s2775_s9 + $0x100] ss:$16 sps:$4 sm:$0xff]   ;;  %v1976_v36 = vld [vmem:[%s2775_s9 + $0x108] ss:$16 sps:$4 sm:$0xff]  }
  0xce   : > { %v1977_v37 = vld [vmem:[%s2775_s9 + $0x124] ss:$16 sps:$4 sm:$0xff]   ;;  %v1979_v38 = vld [vmem:[%s2775_s9 + $0x12c] ss:$16 sps:$4 sm:$0xff]   ;;  %v1981_v42 = vld [vmem:[%s2775_s9 + $0x120] ss:$16 sps:$4 sm:$0xff]  }
  0xcf   : > { %v1982_v43 = vld [vmem:[%s2775_s9 + $0x128] ss:$16 sps:$4 sm:$0xff]   ;;  %v1983_v44 = vld [vmem:[%s2775_s9 + $0x144] ss:$16 sps:$4 sm:$0xff]   ;;  %v1985_v45 = vld [vmem:[%s2775_s9 + $0x14c] ss:$16 sps:$4 sm:$0xff]  }
  0xd0   : > { %1156 = vmatpush1.bf16.msra.mxu0 %v1945_v15  ;;  %1238 = vmatpush1.bf16.msra.mxu1 %v1946_v16  ;;  %v2843_v47 = vshrl.u32 %v492_v41, 7  ;;  %v1987_v48 = vld [vmem:[%s2775_s9 + $0x140] ss:$16 sps:$4 sm:$0xff]   ;;  %v1988_v49 = vld [vmem:[%s2775_s9 + $0x148] ss:$16 sps:$4 sm:$0xff]  }
  0xd1   : > { %1157 = vmatprep.subr.bf16.mxu0 %v1947_v17  ;;  %1239 = vmatprep.subr.bf16.mxu1 %v1949_v18  ;;  %v1989_v50 = vld [vmem:[%s2775_s9 + $0x164] ss:$16 sps:$4 sm:$0xff]   ;;  %v1991_v51 = vld [vmem:[%s2775_s9 + $0x16c] ss:$16 sps:$4 sm:$0xff]   ;;  %v1993_v54 = vld [vmem:[%s2775_s9 + $0x160] ss:$16 sps:$4 sm:$0xff]  }
  0xd2   : > { %v494_v52 = vsub.s32 %v491_v46, %v2843_v47  ;;  %v1628_v53 = vld.sshfl [vmem:[%s277_s4] sm:$0x33 pattern:$0x75316420]  ;;  %v1995_v57 = vld [vmem:[%s2775_s9 + $0x184] ss:$16 sps:$4 sm:$0xff]  }
  0xd3   : > { %v488_v55 = vcombine.high %v1628_v53, %v1628_v53  ;;  %v1994_v56 = vld [vmem:[%s2775_s9 + $0x168] ss:$16 sps:$4 sm:$0xff]   ;;  %v1997_v58 = vld [vmem:[%s2775_s9 + $0x18c] ss:$16 sps:$4 sm:$0xff]   ;;  %v1999_v60 = vld [vmem:[%s2775_s9 + $0x180] ss:$16 sps:$4 sm:$0xff]  }
  0xd4   : > { %1158 = vmatpush1.bf16.msra.mxu0 %v1951_v19  ;;  %1240 = vmatpush1.bf16.msra.mxu1 %v1952_v20  ;;  %v2000_v61 = vld [vmem:[%s2775_s9 + $0x188] ss:$16 sps:$4 sm:$0xff]   ;;  %v2001_v62 = vld [vmem:[%s2775_s9 + $0x1a4] ss:$16 sps:$4 sm:$0xff]   ;;  %v2003_v63 = vld [vmem:[%s2775_s9 + $0x1ac] ss:$16 sps:$4 sm:$0xff]   ;;  %v2872_v13 = vrot.slane %v1628_v53, %v494_v52 }
  0xd5   : > { %1159 = vmatprep.subr.bf16.mxu0 %v1953_v21  ;;  %1241 = vmatprep.subr.bf16.mxu1 %v1955_v22  ;;  %v502_v59 = vrot.slane %v488_v55, %v494_v52  ;;  %v2005_v1 = vld [vmem:[%s2775_s9 + $0x1a0] ss:$16 sps:$4 sm:$0xff]   ;;  %v2006_v2 = vld [vmem:[%s2775_s9 + $0x1a8] ss:$16 sps:$4 sm:$0xff]   ;;  %v2007_v3 = vld [vmem:[%s2775_s9 + $0x1c4] ss:$16 sps:$4 sm:$0xff]  }
  0xd6   : > { %v2009_v4 = vld [vmem:[%s2775_s9 + $0x1cc] ss:$16 sps:$4 sm:$0xff]   ;;  %v2011_v5 = vld [vmem:[%s2775_s9 + $0x1c0] ss:$16 sps:$4 sm:$0xff]   ;;  %v2012_v6 = vld [vmem:[%s2775_s9 + $0x1c8] ss:$16 sps:$4 sm:$0xff]  }
  0xd7   : > { %1181 = vmatprep.mubr.bf16.mxu0 %v502_v59  ;;  %1263 = vmatprep.mubr.bf16.mxu1 %v502_v59  ;;  %v2013_v7 = vld [vmem:[%s2775_s9 + $0x1e4] ss:$16 sps:$4 sm:$0xff]   ;;  %v2015_v8 = vld [vmem:[%s2775_s9 + $0x1ec] ss:$16 sps:$4 sm:$0xff]   ;;  %v2017_v9 = vld [vmem:[%s2775_s9 + $0x1e0] ss:$16 sps:$4 sm:$0xff]   ;;  %v504_v18 = vcombine.high %v502_v59, %v502_v59 }
  0xd8   : > { %1160 = vmatpush1.bf16.msra.mxu0 %v1957_v23  ;;  %1242 = vmatpush1.bf16.msra.mxu1 %v1958_v24  ;;  %v2018_v10 = vld [vmem:[%s2775_s9 + $0x1e8] ss:$16 sps:$4 sm:$0xff]   ;;  %v2021_v11 = vld [vmem:[%s2775_s9 + $0x204] ss:$16 sps:$4 sm:$0xff]   ;;  %v2024_v12 = vld [vmem:[%s2775_s9 + $0x20c] ss:$16 sps:$4 sm:$0xff]  }
  0xd9   : > { %1161 = vmatprep.subr.bf16.mxu0 %v1959_v25  ;;  %1243 = vmatprep.subr.bf16.mxu1 %v1961_v26  ;;  %v2019_v14 = vld [vmem:[%s2775_s9 + $0x200] ss:$16 sps:$4 sm:$0xff]   ;;  %v2022_v15 = vld [vmem:[%s2775_s9 + $0x208] ss:$16 sps:$4 sm:$0xff]   ;;  %v2027_v16 = vld [vmem:[%s2775_s9 + $0x224] ss:$16 sps:$4 sm:$0xff]  }
  0xda   : > { %v2030_v17 = vld [vmem:[%s2775_s9 + $0x22c] ss:$16 sps:$4 sm:$0xff]   ;;  %v2025_v19 = vld [vmem:[%s2775_s9 + $0x220] ss:$16 sps:$4 sm:$0xff]   ;;  %v2028_v20 = vld [vmem:[%s2775_s9 + $0x228] ss:$16 sps:$4 sm:$0xff]  }
  0xdb   : > { %v2033_v21 = vld [vmem:[%s2775_s9 + $0x244] ss:$16 sps:$4 sm:$0xff]   ;;  %v2036_v22 = vld [vmem:[%s2775_s9 + $0x24c] ss:$16 sps:$4 sm:$0xff]   ;;  %v2031_v23 = vld [vmem:[%s2775_s9 + $0x240] ss:$16 sps:$4 sm:$0xff]  }
  0xdc   : > { %1162 = vmatpush1.bf16.msra.mxu0 %v1963_v27  ;;  %1244 = vmatpush1.bf16.msra.mxu1 %v1964_v28  ;;  %v2034_v24 = vld [vmem:[%s2775_s9 + $0x248] ss:$16 sps:$4 sm:$0xff]   ;;  %v2039_v25 = vld [vmem:[%s2775_s9 + $0x264] ss:$16 sps:$4 sm:$0xff]   ;;  %v2042_v26 = vld [vmem:[%s2775_s9 + $0x26c] ss:$16 sps:$4 sm:$0xff]  }
  0xdd   : > { %1163 = vmatprep.subr.bf16.mxu0 %v1965_v29  ;;  %1245 = vmatprep.subr.bf16.mxu1 %v1967_v30  ;;  %v2037_v27 = vld [vmem:[%s2775_s9 + $0x260] ss:$16 sps:$4 sm:$0xff]   ;;  %v2040_v28 = vld [vmem:[%s2775_s9 + $0x268] ss:$16 sps:$4 sm:$0xff]   ;;  %v2045_v29 = vld [vmem:[%s2775_s9 + $0x284] ss:$16 sps:$4 sm:$0xff]  }
  0xde   : > { %v2048_v30 = vld [vmem:[%s2775_s9 + $0x28c] ss:$16 sps:$4 sm:$0xff]   ;;  %v2055_v39 = vld [vmem:[%s2775_s9 + $0x2c0] ss:$16 sps:$4 sm:$0xff]   ;;  %v2058_v40 = vld [vmem:[%s2775_s9 + $0x2c8] ss:$16 sps:$4 sm:$0xff]  }
  0xdf   : > { %v2063_v41 = vld [vmem:[%s2775_s9 + $0x2e4] ss:$16 sps:$4 sm:$0xff]   ;;  %v2072_v46 = vld [vmem:[%s2775_s9 + $0x30c] ss:$16 sps:$4 sm:$0xff]   ;;  %v2073_v52 = vld [vmem:[%s2775_s9 + $0x320] ss:$16 sps:$4 sm:$0xff]  }
  0xe0   : > { %1164 = vmatpush1.bf16.msra.mxu0 %v1969_v31  ;;  %1246 = vmatpush1.bf16.msra.mxu1 %v1970_v32  ;;  %v2043_v31 = vld [vmem:[%s2775_s9 + $0x280] ss:$16 sps:$4 sm:$0xff]   ;;  %v2046_v32 = vld [vmem:[%s2775_s9 + $0x288] ss:$16 sps:$4 sm:$0xff]   ;;  %v2084_v55 = vld [vmem:[%s2775_s9 + $0x34c] ss:$16 sps:$4 sm:$0xff]  }
  0xe1   : > { %1165 = vmatprep.subr.bf16.mxu0 %v1971_v33  ;;  %1247 = vmatprep.subr.bf16.mxu1 %v1973_v34  ;;  %v2051_v33 = vld [vmem:[%s2775_s9 + $0x2a4] ss:$16 sps:$4 sm:$0xff]   ;;  %v2054_v34 = vld [vmem:[%s2775_s9 + $0x2ac] ss:$16 sps:$4 sm:$0xff]   ;;  %v2076_v53 = vld [vmem:[%s2775_s9 + $0x328] ss:$16 sps:$4 sm:$0xff]  }
  0xe2   : > { %v2090_v59 = vld [vmem:[%s2775_s9 + $0x36c] ss:$16 sps:$4 sm:$0xff]  }
  0xe4   : > { %1166 = vmatpush1.bf16.msra.mxu0 %v1975_v35  ;;  %1248 = vmatpush1.bf16.msra.mxu1 %v1976_v36  ;;  %v2049_v35 = vld [vmem:[%s2775_s9 + $0x2a0] ss:$16 sps:$4 sm:$0xff]   ;;  %v2052_v36 = vld [vmem:[%s2775_s9 + $0x2a8] ss:$16 sps:$4 sm:$0xff]  }
  0xe5   : > { %1167 = vmatprep.subr.bf16.mxu0 %v1977_v37  ;;  %1249 = vmatprep.subr.bf16.mxu1 %v1979_v38  ;;  %v2057_v37 = vld [vmem:[%s2775_s9 + $0x2c4] ss:$16 sps:$4 sm:$0xff]   ;;  %v2060_v38 = vld [vmem:[%s2775_s9 + $0x2cc] ss:$16 sps:$4 sm:$0xff]  }
  0xe8   : > { %1168 = vmatpush1.bf16.msra.mxu0 %v1981_v42  ;;  %1250 = vmatpush1.bf16.msra.mxu1 %v1982_v43  ;;  %v2066_v42 = vld [vmem:[%s2775_s9 + $0x2ec] ss:$16 sps:$4 sm:$0xff]   ;;  %v2061_v43 = vld [vmem:[%s2775_s9 + $0x2e0] ss:$16 sps:$4 sm:$0xff]  }
  0xe9   : > { %1169 = vmatprep.subr.bf16.mxu0 %v1983_v44  ;;  %1251 = vmatprep.subr.bf16.mxu1 %v1985_v45  ;;  %v2064_v44 = vld [vmem:[%s2775_s9 + $0x2e8] ss:$16 sps:$4 sm:$0xff]   ;;  %v2069_v45 = vld [vmem:[%s2775_s9 + $0x304] ss:$16 sps:$4 sm:$0xff]  }
  0xec   : > { %1170 = vmatpush1.bf16.msra.mxu0 %v1987_v48  ;;  %1252 = vmatpush1.bf16.msra.mxu1 %v1988_v49  ;;  %v2067_v48 = vld [vmem:[%s2775_s9 + $0x300] ss:$16 sps:$4 sm:$0xff]   ;;  %v2070_v49 = vld [vmem:[%s2775_s9 + $0x308] ss:$16 sps:$4 sm:$0xff]  }
  0xed   : > { %1171 = vmatprep.subr.bf16.mxu0 %v1989_v50  ;;  %1253 = vmatprep.subr.bf16.mxu1 %v1991_v51  ;;  %v2075_v50 = vld [vmem:[%s2775_s9 + $0x324] ss:$16 sps:$4 sm:$0xff]   ;;  %v2078_v51 = vld [vmem:[%s2775_s9 + $0x32c] ss:$16 sps:$4 sm:$0xff]  }
  0xf0   : > { %1172 = vmatpush1.bf16.msra.mxu0 %v1993_v54  ;;  %1254 = vmatpush1.bf16.msra.mxu1 %v1994_v56  ;;  %v2081_v54 = vld [vmem:[%s2775_s9 + $0x344] ss:$16 sps:$4 sm:$0xff]   ;;  %v2079_v56 = vld [vmem:[%s2775_s9 + $0x340] ss:$16 sps:$4 sm:$0xff]  }
  0xf1   : > { %1173 = vmatprep.subr.bf16.mxu0 %v1995_v57  ;;  %1255 = vmatprep.subr.bf16.mxu1 %v1997_v58  ;;  %v2082_v57 = vld [vmem:[%s2775_s9 + $0x348] ss:$16 sps:$4 sm:$0xff]   ;;  %v2087_v58 = vld [vmem:[%s2775_s9 + $0x364] ss:$16 sps:$4 sm:$0xff]  }
  0xf4   : > { %1174 = vmatpush1.bf16.msra.mxu0 %v1999_v60  ;;  %1256 = vmatpush1.bf16.msra.mxu1 %v2000_v61  ;;  %v2085_v60 = vld [vmem:[%s2775_s9 + $0x360] ss:$16 sps:$4 sm:$0xff]   ;;  %v2088_v61 = vld [vmem:[%s2775_s9 + $0x368] ss:$16 sps:$4 sm:$0xff]  }
  0xf5   : > { %1175 = vmatprep.subr.bf16.mxu0 %v2001_v62  ;;  %1257 = vmatprep.subr.bf16.mxu1 %v2003_v63  ;;  %v2093_v62 = vld [vmem:[%s2775_s9 + $0x384] ss:$16 sps:$4 sm:$0xff]   ;;  %v2096_v63 = vld [vmem:[%s2775_s9 + $0x38c] ss:$16 sps:$4 sm:$0xff]  }
  0xf8   : > { %1176 = vmatpush1.bf16.msra.mxu0 %v2005_v1  ;;  %1258 = vmatpush1.bf16.msra.mxu1 %v2006_v2  ;;  %v2091_v1 = vld [vmem:[%s2775_s9 + $0x380] ss:$16 sps:$4 sm:$0xff]   ;;  %v2094_v2 = vld [vmem:[%s2775_s9 + $0x388] ss:$16 sps:$4 sm:$0xff]  }
  0xf9   : > { %1177 = vmatprep.subr.bf16.mxu0 %v2007_v3  ;;  %1259 = vmatprep.subr.bf16.mxu1 %v2009_v4  ;;  %v2099_v3 = vld [vmem:[%s2775_s9 + $0x3a4] ss:$16 sps:$4 sm:$0xff]   ;;  %v2102_v4 = vld [vmem:[%s2775_s9 + $0x3ac] ss:$16 sps:$4 sm:$0xff]  }
  0xfc   : > { %1178 = vmatpush1.bf16.msra.mxu0 %v2011_v5  ;;  %1260 = vmatpush1.bf16.msra.mxu1 %v2012_v6  ;;  %v2097_v5 = vld [vmem:[%s2775_s9 + $0x3a0] ss:$16 sps:$4 sm:$0xff]   ;;  %v2100_v6 = vld [vmem:[%s2775_s9 + $0x3a8] ss:$16 sps:$4 sm:$0xff]  }
  0xfd   : > { %1179 = vmatprep.subr.bf16.mxu0 %v2013_v7  ;;  %1261 = vmatprep.subr.bf16.mxu1 %v2015_v8  ;;  %v2105_v7 = vld [vmem:[%s2775_s9 + $0x3c4] ss:$16 sps:$4 sm:$0xff]   ;;  %v2108_v8 = vld [vmem:[%s2775_s9 + $0x3cc] ss:$16 sps:$4 sm:$0xff]  }
 0x100   : > { %1180 = vmatpush1.bf16.msra.mxu0 %v2017_v9  ;;  %1262 = vmatpush1.bf16.msra.mxu1 %v2018_v10  ;;  %v2103_v9 = vld [vmem:[%s2775_s9 + $0x3c0] ss:$16 sps:$4 sm:$0xff]   ;;  %v2106_v10 = vld [vmem:[%s2775_s9 + $0x3c8] ss:$16 sps:$4 sm:$0xff]  }
 0x101   : > { %1190 = vmatprep.subr.bf16.mxu0 %v2021_v11  ;;  %1272 = vmatprep.subr.bf16.mxu1 %v2024_v12  ;;  %v2111_v11 = vld [vmem:[%s2775_s9 + $0x3e4] ss:$16 sps:$4 sm:$0xff]   ;;  %v2114_v12 = vld [vmem:[%s2775_s9 + $0x3ec] ss:$16 sps:$4 sm:$0xff]  }
 0x103   : > { %1182 = vmatmul.mubr.bf16.vlgmr.msra.gmra.mrb[0].mxu0 %v2872_v13  ;;  %1264 = vmatmul.mubr.bf16.vlgmr.msra.gmra.mrb[0].mxu1 %v2872_v13 }
 0x104   : > { %1191 = vmatpush1.bf16.msra.mxu0 %v2019_v14  ;;  %1273 = vmatpush1.bf16.msra.mxu1 %v2022_v15  ;;  %v2109_v14 = vld [vmem:[%s2775_s9 + $0x3e0] ss:$16 sps:$4 sm:$0xff]   ;;  %v2112_v15 = vld [vmem:[%s2775_s9 + $0x3e8] ss:$16 sps:$4 sm:$0xff]  }
 0x105   : > { %1192 = vmatprep.subr.bf16.mxu0 %v2027_v16  ;;  %1274 = vmatprep.subr.bf16.mxu1 %v2030_v17  ;;  %v503_v16 = vcombine.high %v2872_v13, %v2872_v13  ;;  %v1321_v13 = vsub.s32 (!%p1757_p2), 0, %v2843_v47 }
 0x106   : > { %1222 = vmatprep.mubr.bf16.mxu0 %v504_v18  ;;  %1304 = vmatprep.mubr.bf16.mxu1 %v504_v18 }
 0x108   : > { %1193 = vmatpush1.bf16.msra.mxu0 %v2025_v19  ;;  %1275 = vmatpush1.bf16.msra.mxu1 %v2028_v20 }
 0x109   : > { %1194 = vmatprep.subr.bf16.mxu0 %v2033_v21  ;;  %1276 = vmatprep.subr.bf16.mxu1 %v2036_v22 }
 0x10c   : > { %1195 = vmatpush1.bf16.msra.mxu0 %v2031_v23  ;;  %1277 = vmatpush1.bf16.msra.mxu1 %v2034_v24 }
 0x10d   : > { %1196 = vmatprep.subr.bf16.mxu0 %v2039_v25  ;;  %1278 = vmatprep.subr.bf16.mxu1 %v2042_v26  ;;  %v1329_v25 = vsub.s32 (!%p1757_p2), 2, %v2843_v47  ;;  %v2403_v26 = vmov (!%p1757_p2), 1983009808  }
 0x110   : > { %1197 = vmatpush1.bf16.msra.mxu0 %v2037_v27  ;;  %1279 = vmatpush1.bf16.msra.mxu1 %v2040_v28  ;;  %v1342_v27 = vunpack.c.l.s4 (!%p1757_p2), %v2403_v26  ;;  %v1317_v28 = vld [vmem:[%s2793_s8] sm:$0xf] (!%p1757_p2) }
 0x111   : > { %1198 = vmatprep.subr.bf16.mxu0 %v2045_v29  ;;  %1280 = vmatprep.subr.bf16.mxu1 %v2048_v30  ;;  %v1325_v29 = vsub.s32 (!%p1757_p2), 1, %v2843_v47  ;;  %v1333_v30 = vsub.s32 (!%p1757_p2), 3, %v2843_v47 }
 0x114   : > { %1199 = vmatpush1.bf16.msra.mxu0 %v2043_v31  ;;  %1281 = vmatpush1.bf16.msra.mxu1 %v2046_v32  ;;  %v1340_v31 = vcombine.high (!%p1757_p2), %v2799_v0, %v2799_v0  ;;  %v1343_v32 = vunpack.c.0.s8 (!%p1757_p2), %v1342_v27 }
 0x115   : > { %1200 = vmatprep.subr.bf16.mxu0 %v2051_v33  ;;  %1282 = vmatprep.subr.bf16.mxu1 %v2054_v34  ;;  %v1322_v33 = vrot.slane (!%p1757_p2), %v1317_v28, %v1321_v13  ;;  %v1330_v34 = vrot.slane (!%p1757_p2), %v1317_v28, %v1329_v25 }
 0x118   : > { %1201 = vmatpush1.bf16.msra.mxu0 %v2049_v35  ;;  %1283 = vmatpush1.bf16.msra.mxu1 %v2052_v36  ;;  %v1346_v35 = vsub.s32 (!%p1757_p2), %v1343_v32, %v2843_v47  ;;  %v1326_v36 = vrot.slane (!%p1757_p2), %v1317_v28, %v1325_v29 }
 0x119   : > { %1202 = vmatprep.subr.bf16.mxu0 %v2057_v37  ;;  %1284 = vmatprep.subr.bf16.mxu1 %v2060_v38  ;;  %v1334_v37 = vrot.slane (!%p1757_p2), %v1317_v28, %v1333_v30 }
 0x11a   : > { %v1347_v38 = vrot.slane (!%p1757_p2), %v2799_v0, %v1346_v35 }
 0x11c   : > { %1203 = vmatpush1.bf16.msra.mxu0 %v2055_v39  ;;  %1285 = vmatpush1.bf16.msra.mxu1 %v2058_v40  ;;  %v1354_v39 = vrot.slane (!%p1757_p2), %v1340_v31, %v1346_v35  ;;  %v1355_v40 = vcombine.high (!%p1757_p2), %v1347_v38, %v1347_v38 }
 0x11d   : > { %1204 = vmatprep.subr.bf16.mxu0 %v2063_v41  ;;  %1286 = vmatprep.subr.bf16.mxu1 %v2066_v42  ;;  %v1361_v42 = vmul.f32 (!%p1757_p2), %v1347_v38, %v1322_v33 }
 0x11e   : > { %v1356_v41 = vcombine.high (!%p1757_p2), %v1354_v39, %v1354_v39 }
 0x120   : > { %1205 = vmatpush1.bf16.msra.mxu0 %v2061_v43  ;;  %1287 = vmatpush1.bf16.msra.mxu1 %v2064_v44  ;;  %v1363_v43 = vmul.f32 (!%p1757_p2), %v1354_v39, %v1330_v34  ;;  %v1362_v44 = vmul.f32 (!%p1757_p2), %v1355_v40, %v1326_v36 }
 0x121   : > { %1206 = vmatprep.subr.bf16.mxu0 %v2069_v45  ;;  %1288 = vmatprep.subr.bf16.mxu1 %v2072_v46  ;;  %v1364_v45 = vmul.f32 (!%p1757_p2), %v1356_v41, %v1334_v37 }
 0x122   : > { %v1369_v46 = vcombine.low (!%p1757_p2), %v1361_v42, %v1362_v44 }
 0x124   : > { %1207 = vmatpush1.bf16.msra.mxu0 %v2067_v48  ;;  %1289 = vmatpush1.bf16.msra.mxu1 %v2070_v49  ;;  %v1370_v48 = vcombine.low (!%p1757_p2), %v1363_v43, %v1364_v45  ;;  %v1377_v49 = vrot.slane (!%p1757_p2), %v1369_v46, %v1346_v35 }
 0x125   : > { %1208 = vmatprep.subr.bf16.mxu0 %v2075_v50  ;;  %1290 = vmatprep.subr.bf16.mxu1 %v2078_v51 }
 0x126   : > { %v1384_v50 = vrot.slane (!%p1757_p2), %v1370_v48, %v1346_v35 }
 0x128   : > { %1209 = vmatpush1.bf16.msra.mxu0 %v2073_v52  ;;  %1291 = vmatpush1.bf16.msra.mxu1 %v2076_v53  ;;  %v1385_v51 = vcombine.low (!%p1757_p2), %v1377_v49, %v1384_v50 }
 0x129   : > { %1210 = vmatprep.subr.bf16.mxu0 %v2081_v54  ;;  %1292 = vmatprep.subr.bf16.mxu1 %v2084_v55 }
 0x12a   : > { %1387 = vst [vmem:[%s2942_s5] sm:$0xff] (!%p1757_p2), %v1385_v51 }
 0x12c   : > { %1211 = vmatpush1.bf16.msra.mxu0 %v2079_v56  ;;  %1293 = vmatpush1.bf16.msra.mxu1 %v2082_v57 }
 0x12d   : > { %1212 = vmatprep.subr.bf16.mxu0 %v2087_v58  ;;  %1294 = vmatprep.subr.bf16.mxu1 %v2090_v59 }
 0x130   : > { %1213 = vmatpush1.bf16.msra.mxu0 %v2085_v60  ;;  %1295 = vmatpush1.bf16.msra.mxu1 %v2088_v61 }
 0x131   : > { %1214 = vmatprep.subr.bf16.mxu0 %v2093_v62  ;;  %1296 = vmatprep.subr.bf16.mxu1 %v2096_v63 }
 0x134   : > { %1215 = vmatpush1.bf16.msra.mxu0 %v2091_v1  ;;  %1297 = vmatpush1.bf16.msra.mxu1 %v2094_v2 }
 0x135   : > { %1216 = vmatprep.subr.bf16.mxu0 %v2099_v3  ;;  %1298 = vmatprep.subr.bf16.mxu1 %v2102_v4 }
 0x138   : > { %1217 = vmatpush1.bf16.msra.mxu0 %v2097_v5  ;;  %1299 = vmatpush1.bf16.msra.mxu1 %v2100_v6 }
 0x139   : > { %1218 = vmatprep.subr.bf16.mxu0 %v2105_v7  ;;  %1300 = vmatprep.subr.bf16.mxu1 %v2108_v8 }
 0x13c   : > { %1219 = vmatpush1.bf16.msra.mxu0 %v2103_v9  ;;  %1301 = vmatpush1.bf16.msra.mxu1 %v2106_v10 }
 0x13d   : > { %1220 = vmatprep.subr.bf16.mxu0 %v2111_v11  ;;  %1302 = vmatprep.subr.bf16.mxu1 %v2114_v12 }
 0x140   : > { %1221 = vmatpush1.bf16.msra.mxu0 %v2109_v14  ;;  %1303 = vmatpush1.bf16.msra.mxu1 %v2112_v15 }
 0x143   : > { %1223 = vmatmul.mubr.bf16.vlgmr.msra.gmra.mrb[0].mxu0 %v503_v16  ;;  %1305 = vmatmul.mubr.bf16.vlgmr.msra.gmra.mrb[0].mxu1 %v503_v16 }
 0x213   : > { %1316 = sbr.rel (%p1757_p2) target bundleno = 538 (0x21a), region = 56 }
 0x216   : > { %v1224_v17 = vpop.f32.mrb[0].mxu0  ;;  %v1306_v18 = vpop.f32.mrb[0].mxu1 }
 0x217   : > { %v1226_v19 = vpop.f32.mrb[1].mxu0  ;;  %v1308_v20 = vpop.f32.mrb[1].mxu1 }
 0x218   : > { %v1228_v21 = vpop.f32.mrb[2].mxu0  ;;  %v1310_v22 = vpop.f32.mrb[2].mxu1 }
 0x219   : > { %v1229_v23 = vpop.f32.mrb[3].mxu0  ;;  %v1311_v24 = vpop.f32.mrb[3].mxu1 }
 0x21a PF: > { %v2404_v52 = vmov 1983009808   ;;  %v1390_v54 = vcombine.high %v2799_v0, %v2799_v0  ;;  %s3100_s24 = sld [smem:[#allocation18_spill]]  ;;  %v1388_v6 = vld [vmem:[%s2942_s5] sm:$0xff]  ;;  %s1454_s21 = sshll.u32 %s2942_s5, 4  ;;  %s2967_s21 = int_to_ptr.vmem [resolvable:$true] %s1454_s21 }
 0x21b   : > { %v1392_v53 = vunpack.c.l.s4 %v2404_v52  ;;  %s3101_s0 = sld [smem:[#allocation27_spill]]  ;;  %s1440_s4 = scalar_lea.sflag [#allocation4], %s2782_s25 }
 0x21c   : > { %s2235_s2 = scalar_lea.vmem %s2967_s21, 128  ;;  %p3102_p12 = scmp.ne.s32.totalorder %s3090_s10, 0 }
 0x21d   : > { %v1393_v55 = vunpack.c.0.s8 %v1392_v53  ;;  %p2236_p0 = scmp.ne.s32.totalorder %s2967_s21, %s2235_s2  ;;  %s2405_s26 = smov [#allocation10]  }
 0x21e   : > { %s2239_s13 = sshll.u32 %s2405_s26, 4  ;;  %s2240_s13 = int_to_ptr.vmem [resolvable:$false] %s2239_s13 }
 0x21f   : > { %v1396_v56 = vsub.s32 %v1393_v55, %v2843_v47  ;;  %p2237_p3 = pnand %p2236_p0, %p3102_p12  ;;  %s2241_s14 = scalar_lea.vmem %s2240_s13, 256 }
 0x220   : > { %s1767_s11 = sshll.u32 %s3100_s24, 7  ;;  %p2242_p9 = scmp.lt.s32.totalorder %s2967_s21, %s2240_s13 }
 0x221   : > { %v1397_v57 = vrot.slane %v2799_v0, %v1396_v56  ;;  %v1404_v58 = vrot.slane %v1390_v54, %v1396_v56  ;;  %s2965_s6 = scalar_lea.hbm %s3101_s0, %s1767_s11  ;;  %p2238_p11 = pneg %p2237_p3 }
 0x222   : > { %p2243_p6 = scmp.lt.s32.totalorder %s2241_s14, %s2235_s2 }
 0x223   : > { %v1405_v59 = vcombine.high %v1397_v57, %v1397_v57  ;;  %v1406_v60 = vcombine.high %v1404_v58, %v1404_v58  ;;  %v1411_v61 = vmul.f32 %v1397_v57, %v1224_v17  ;;  %v1413_v62 = vmul.f32 %v1404_v58, %v1306_v18 }
 0x224   : > { %p2244_p5 = por %p2243_p6, %p2242_p9 }
 0x225   : > { %v1412_v63 = vmul.f32 %v1405_v59, %v1226_v19  ;;  %v1414_v1 = vmul.f32 %v1406_v60, %v1308_v20 }
 0x226   : > { %p2245_p4 = pnand %p2244_p5, %p2238_p11 }
 0x227   : > { %v1419_v2 = vcombine.low %v1411_v61, %v1412_v63  ;;  %v1420_v3 = vcombine.low %v1413_v62, %v1414_v1 }
 0x229   : > { %v1427_v4 = vrot.slane %v1419_v2, %v1396_v56  ;;  %v1434_v5 = vrot.slane %v1420_v3, %v1396_v56 }
 0x22b   : > { %v1435_v47 = vcombine.low %v1427_v4, %v1434_v5 }
 0x22d   : > { %v1437_v7 = vadd.f32 %v1435_v47, %v1388_v6 }
 0x22f   : > { %1438 = vst [vmem:[%s2942_s5] sm:$0xff] %v1437_v7 }
 0x230   : > { %2248 = shalt.err (!%p2245_p4)
}
 0x231   : > { %s2249_s9 = scalar_lea.hbm %s2965_s6, 128  ;;  %s2253_s23 = scalar_lea.hbm %s3101_s0, 256 }
 0x232   : > { %p2250_p13 = scmp.ne.s32.totalorder %s2965_s6, %s2249_s9  ;;  %p2254_p7 = scmp.lt.u32.totalorder %s2965_s6, %s3101_s0 }
 0x233   : > { %p2255_p8 = scmp.lt.u32.totalorder %s2253_s23, %s2249_s9  ;;  %p2257_p0 = scmp.lt.u32.totalorder %s2249_s9, %s2965_s6 }
 0x234   : > { %p2251_p1 = pnand %p2250_p13, %p3102_p12 }
 0x235   : > { %p2256_p2 = por %p2255_p8, %p2254_p7 }
 0x236   : > { %p2252_p10 = pneg %p2251_p1 }
 0x237   : > { %p2258_p3 = por %p2257_p0, %p2256_p2 }
 0x239   : > { %p2259_p11 = pnand %p2258_p3, %p2252_p10 }
 0x23b   : > { %2262 = shalt.err (!%p2259_p11)
}
 0x23c   : > { %1784 = dma.vmem_to_hbm [thread:$0]  (%p3102_p12), %s2967_s21, 128, %s2965_s6, %s1440_s4  }
 0x23d PF: > { %p1804_p9 = scmp.ge.s32.totalorder %s2393_s28, 2  ;;  %s1466_s8 = sand.u32 1, %s2341_s15  }
 0x23e   : > { %p3103_p6 = scmp.ne.s32.totalorder %s3091_s29, 0  ;;  %s1467_s5 = scalar_lea.sflag [#allocation4], %s1466_s8 }
 0x240   : > { %p1800_p5 = pnand %p1804_p9, %p3103_p6 }
 0x242   : > { %2336 = dma.done.wait (!%p1800_p5), %s1467_s5, 128  }
 0x243   : > { %2338 = vsyncadd (!%p1800_p5), %s1467_s5, 4294967168  ;;  %s26_s28 = sadd.s32 1, %s2393_s28   ;;  %s3105_s10 = sld [smem:[#allocation16_spill]] }
 0x244   : > { %p2997_p4 = scmp.ge.s32.totalorder %s26_s28, 6   ;;  %s3106_s20 = sld [smem:[#allocation23_spill]] }
 0x245   : > { %s3107_s11 = sld [smem:[#allocation17_spill]]  ;;  %s3108_s23 = sld [smem:[#allocation22_spill]] }
 0x246   : > { %s3109_s29 = sld [smem:[#allocation19_spill]]  ;;  %s3110_s26 = sld [smem:[#allocation20_spill]] }
 0x247   : > { %s3111_s6 = sld [smem:[#allocation21_spill]]  ;;  %s3113_s15 = smov %s2345_s16 }
 0x248   : > { %s3114_s16 = smov %s2349_s17  ;;  %s3115_s17 = smov %s2663_s12 }
 0x249   : > { %s3116_s18 = smov %s2357_s19  ;;  %s3117_s19 = smov %s3105_s10 }
 0x24a   : > { %s3118_s21 = smov %s2369_s22  ;;  %s3121_s25 = smov %s2389_s27 }
 0x24b   : > { %s3119_s22 = smov %s3107_s11  ;;  %25 = sbr.rel (!%p2997_p4) target bundleno = 19 (0x13), region = 122 }
 0x24c   : > { %s3120_s24 = smov %s3109_s29 }
 0x24d   : > { %s3122_s27 = smov %s3111_s6 }
 0x252   :  { %1472 = vsyncpa [#allocation3], 1 }
 0x253   :  { %1474 = vsyncpa [#allocation3 + $0x1], 1 }
 0x254   :  { %1475 = vsyncpa [#allocation6], 1 }
 0x255   :  { %1477 = vsyncpa [#allocation6 + $0x1], 1 }
 0x256   :  { %1478 = vsyncpa [#allocation9], 1 }
 0x257   :  { %1480 = vsyncpa [#allocation9 + $0x1], 1 }
 0x258   :  { %1481 = vsyncpa [#allocation4], 1 }
 0x259   :  { %1483 = vsyncpa [#allocation4 + $0x1], 1 }

</bundles_post_ra>
